<compile_context>
chip_gen: v6e
topology: v6e:2x2x1
jax: 0.10.0
libtpu: 0.0.40
codegen_flags: <defaults>
</compile_context>

<pallas_src>
import functools
import math

import jax
import jax.numpy as jnp
from jax.experimental import pallas as pl
from jax.experimental.pallas import tpu as pltpu

ANCHORS = jnp.array([(10, 13), (16, 30), (33, 23)], dtype=jnp.float32)  # unused in forward
IMG_SIZE = 416                                                          # unused in forward


def _elem_loss(x, t, is_mse):
    """Elementwise loss: MSE on box columns, stable BCE-with-logits elsewhere."""
    mse = (x - t) * (x - t)
    bce = jnp.maximum(x, 0.0) - x * t + jnp.log1p(jnp.exp(-jnp.abs(x)))
    return jnp.where(is_mse, mse, bce)


def _yolo_loss_kernel(mask_ref, pred_ref, tgt_ref, out_ref, *,
                      grid_len, valid_rows_last, need_row_mask):
    """One grid step: reduce a (tile_rows, lane_width) lane-dense tile to a partial sum."""
    x = pred_ref[...]            # (tile_rows, lane_width) f32
    t = tgt_ref[...]             # (tile_rows, lane_width) f32

    # Sublane-broadcast the tiny (1, LW) column mask once, compare once, then a
    # single vselect per element (replaces the old 4-op arithmetic blend).
    is_mse = jnp.broadcast_to(mask_ref[...], x.shape) > 0.5
    elem = _elem_loss(x, t, is_mse)

    if need_row_mask:
        # Only the final block can contain out-of-range (ragged) rows; gate the
        # masking so every other block takes the unmasked sum path.
        i = pl.program_id(0)

        @pl.when(i == grid_len - 1)
        def _():
            row = jax.lax.broadcasted_iota(jnp.int32, elem.shape, 0)
            masked = jnp.where(row < valid_rows_last, elem, 0.0)
            out_ref[...] = jnp.broadcast_to(jnp.sum(masked), out_ref.shape)

        @pl.when(i != grid_len - 1)
        def _():
            out_ref[...] = jnp.broadcast_to(jnp.sum(elem), out_ref.shape)
    else:
        out_ref[...] = jnp.broadcast_to(jnp.sum(elem), out_ref.shape)


def _tail_loss(pred_tail, tgt_tail, C):
    """Plain-JAX reduction for the small ragged tail the Pallas grid skips."""
    if pred_tail.shape[0] == 0:
        return jnp.float32(0.0)
    # Tail starts at a multiple of lane_width (a multiple of C), so the column
    # index of element k within the tail is simply k % C.
    col = jnp.arange(pred_tail.shape[0], dtype=jnp.int32) % C
    return jnp.sum(_elem_loss(pred_tail, tgt_tail, col < 4))


def yolo_loss(predictions, target_boxes, target_conf, target_class, *,
              block_bytes=4 * 1024 * 1024):
    """predictions : [B, 3, H, W, 5+num_classes] float32
       target_boxes: [B, 3, H, W, 4]
       target_conf : [B, 3, H, W]
       target_class: [B, 3, H, W, num_classes]
    Returns (mse_sum(boxes) + bce_sum(conf) + bce_sum(class)) / B, matching the
    PyTorch module (reduction='sum' losses, divided by batch size)."""
    B = predictions.shape[0]
    C = predictions.shape[-1]

    # Interleaved target slab [..., C] = [boxes | conf | class]; one extra HBM
    # pass over the targets, the price of elementwise alignment with the
    # lane-dense prediction slab.
    # TODO(synk): replace with an in-kernel DMA interleave from the native target
    # layouts to cut the concat's read+write pass for large inputs.
    targets_full = jnp.concatenate(
        [target_boxes, target_conf[..., None], target_class], axis=-1)

    pred_flat = predictions.astype(jnp.float32).reshape(-1)   # free bitcast reshape
    tgt_flat = targets_full.astype(jnp.float32).reshape(-1)
    total = int(pred_flat.shape[0])

    # Lane-dense row width: multiple of 128 (full vreg lanes) and of C (so the
    # box/conf/class column pattern repeats identically in every row -> one
    # (1, LW) mask selects MSE vs BCE with no in-kernel modulo).
    lane_width = (C * 128) // math.gcd(C, 128)

    rows = total // lane_width
    rem = total - rows * lane_width

    tail_loss = jnp.float32(0.0)
    if rem or rows == 0:
        main = rows * lane_width
        # Ragged tail (< one lane-dense row): tiny plain-JAX reduction; the big
        # slabs are never jnp.pad'ed.
        tail_loss = _tail_loss(pred_flat[main:], tgt_flat[main:], C)
        if rows == 0:
            return tail_loss / jnp.float32(B)
        # NOTE: this prefix slice may still materialize a copy at the XLA level;
        # the common divisible case (incl. the demo) never takes this branch and
        # its reshape below is a pure bitcast.
        pred_flat = pred_flat[:main]
        tgt_flat = tgt_flat[:main]

    pred2d = pred_flat.reshape(rows, lane_width)
    tgt2d = tgt_flat.reshape(rows, lane_width)

    # Tile sizing: ~block_bytes per input block, sublane-aligned (multiple of 8).
    bytes_per_row = lane_width * 4
    max_tile_rows = max(8, (block_bytes // bytes_per_row) // 8 * 8)
    if rows <= max_tile_rows:
        tile_rows = rows            # single block == full array (always legal)
        grid_len = 1
        need_row_mask = False
        valid_rows_last = rows
    else:
        tile_rows = max_tile_rows
        # Prefer a tile height that divides `rows` exactly so no block is ragged.
        for t in range(max_tile_rows, max(8, max_tile_rows // 2) - 1, -8):
            if rows % t == 0:
                tile_rows = t
                break
        grid_len = pl.cdiv(rows, tile_rows)
        need_row_mask = (rows % tile_rows) != 0
        valid_rows_last = rows - (grid_len - 1) * tile_rows

    # (1, lane_width) float mask: 1.0 on box (MSE) columns, 0.0 on conf/class (BCE).
    col_mask = (jnp.arange(lane_width, dtype=jnp.int32) % C < 4).astype(
        jnp.float32)[None, :]

    kernel = functools.partial(
        _yolo_loss_kernel,
        grid_len=grid_len,
        valid_rows_last=valid_rows_last,
        need_row_mask=need_row_mask,
    )

    partials = pl.pallas_call(
        kernel,
        out_shape=jax.ShapeDtypeStruct((grid_len, 8, 128), jnp.float32),
        grid_spec=pltpu.PrefetchScalarGridSpec(
            num_scalar_prefetch=0,
            grid=(grid_len,),
            in_specs=[
                pl.BlockSpec((1, lane_width), lambda i: (0, 0)),          # col mask (resident)
                pl.BlockSpec((tile_rows, lane_width), lambda i: (i, 0)),  # predictions
                pl.BlockSpec((tile_rows, lane_width), lambda i: (i, 0)),  # targets
            ],
            out_specs=pl.BlockSpec((1, 8, 128), lambda i: (i, 0, 0)),     # per-block partial sum
        ),
        compiler_params=pltpu.CompilerParams(
            # Independent per-block partial sums -> fully parallel grid
            # (megacore-shardable on v7x, no carried accumulator dependency).
            dimension_semantics=("parallel",),
            # 2 inputs x 2 buffers x ~4 MiB ≈ 16 MiB: raise the scoped limit so
            # the same block size is safe on v5e (16 MiB default) and leaves
            # headroom on v7x (64 MiB physical per TC).
            vmem_limit_bytes=32 * 1024 * 1024,
        ),
    )(col_mask, pred2d, tgt2d)

    total_loss = jnp.sum(partials[:, 0, 0]) + tail_loss
    return total_loss / jnp.float32(B)


def _reference_loss(predictions, target_boxes, target_conf, target_class):
    """Pure-JAX reference mirroring the PyTorch module's forward()."""
    B = predictions.shape[0]
    pred_boxes = predictions[..., :4]
    pred_conf = predictions[..., 4]
    pred_cls = predictions[..., 5:]

    box_loss = jnp.sum((pred_boxes - target_boxes) ** 2)

    def bce(x, t):
        return jnp.sum(jnp.maximum(x, 0.0) - x * t + jnp.log1p(jnp.exp(-jnp.abs(x))))

    conf_loss = bce(pred_conf, target_conf)
    cls_loss = bce(pred_cls, target_class)
    return (box_loss + conf_loss + cls_loss) / B


if __name__ == "__main__":
    # Small, deterministic example shapes consistent with the module's forward:
    # predictions [B, 3, H, W, 5+num_classes]
    B, A, H, W, NUM_CLASSES = 2, 3, 16, 16, 4
    C = 5 + NUM_CLASSES

    key = jax.random.PRNGKey(0)
    k1, k2, k3, k4 = jax.random.split(key, 4)

    predictions = jax.random.normal(k1, (B, A, H, W, C), dtype=jnp.float32)
    target_boxes = jax.random.uniform(k2, (B, A, H, W, 4), dtype=jnp.float32)
    target_conf = (jax.random.uniform(k3, (B, A, H, W)) > 0.5).astype(jnp.float32)
    target_class = (jax.random.uniform(k4, (B, A, H, W, NUM_CLASSES)) > 0.5).astype(
        jnp.float32
    )

    out = yolo_loss(predictions, target_boxes, target_conf, target_class)
    out = jax.block_until_ready(out)

    ref = _reference_loss(predictions, target_boxes, target_conf, target_class)
    ref = jax.block_until_ready(ref)

    assert jnp.allclose(out, ref, rtol=1e-4, atol=1e-3), (out, ref)
    print("KERNEL_OK")
</pallas_src>

<mosaic_0001>
module attributes {stable_mosaic.version = 11 : i64} {
  func.func @_yolo_loss_kernel(%arg0: i32, %arg1: memref<1x1152xf32, #tpu.memory_space<vmem>>, %arg2: memref<12x1152xf32, #tpu.memory_space<vmem>>, %arg3: memref<12x1152xf32, #tpu.memory_space<vmem>>, %arg4: memref<1x8x128xf32, #tpu.memory_space<vmem>>) attributes {dimension_semantics = [#tpu.dimension_semantics<parallel>], iteration_bounds = array<i64: 1>, scalar_prefetch = 0 : i64, scratch_operands = 0 : i64, tpu.core_type = #tpu.core_type<tc>, window_params = [{pipeline_mode = #tpu.pipeline_mode<synchronous>, transform_indices = @transform_0, window_bounds = array<i64: 1, 1152>}, {transform_indices = @transform_1, window_bounds = array<i64: 12, 1152>}, {transform_indices = @transform_2, window_bounds = array<i64: 12, 1152>}, {transform_indices = @transform_3, window_bounds = array<i64: 1, 8, 128>}]} {
    %c0 = arith.constant 0 : index
    %c0_0 = arith.constant 0 : index
    %0 = vector.load %arg2[%c0, %c0_0] : memref<12x1152xf32, #tpu.memory_space<vmem>>, vector<12x1152xf32>
    %c0_1 = arith.constant 0 : index
    %c0_2 = arith.constant 0 : index
    %1 = vector.load %arg3[%c0_1, %c0_2] : memref<12x1152xf32, #tpu.memory_space<vmem>>, vector<12x1152xf32>
    %c0_3 = arith.constant 0 : index
    %c0_4 = arith.constant 0 : index
    %2 = vector.load %arg1[%c0_3, %c0_4] : memref<1x1152xf32, #tpu.memory_space<vmem>>, vector<1x1152xf32>
    %3 = vector.shape_cast %2 : vector<1x1152xf32> to vector<1x1152xf32>
    %4 = vector.broadcast %3 : vector<1x1152xf32> to vector<12x1152xf32>
    %cst = arith.constant 5.000000e-01 : f32
    %5 = vector.broadcast %cst : f32 to vector<12x1152xf32>
    %6 = arith.cmpf ogt, %4, %5 : vector<12x1152xf32>
    %7 = arith.subf %0, %1 : vector<12x1152xf32>
    %8 = arith.subf %0, %1 : vector<12x1152xf32>
    %9 = arith.mulf %7, %8 : vector<12x1152xf32>
    %cst_5 = arith.constant 0.000000e+00 : f32
    %10 = vector.broadcast %cst_5 : f32 to vector<12x1152xf32>
    %11 = arith.maximumf %0, %10 : vector<12x1152xf32>
    %12 = arith.mulf %0, %1 : vector<12x1152xf32>
    %13 = arith.subf %11, %12 : vector<12x1152xf32>
    %14 = math.absf %0 : vector<12x1152xf32>
    %cst_6 = arith.constant 0.000000e+00 : f32
    %15 = vector.broadcast %cst_6 : f32 to vector<12x1152xf32>
    %16 = arith.subf %15, %14 : vector<12x1152xf32>
    %17 = math.exp %16 : vector<12x1152xf32>
    %18 = math.log1p %17 : vector<12x1152xf32>
    %19 = arith.addf %13, %18 : vector<12x1152xf32>
    %20 = arith.select %6, %9, %19 : vector<12x1152xi1>, vector<12x1152xf32>
    %21 = vector.shape_cast %20 : vector<12x1152xf32> to vector<1x12x1152xf32>
    %cst_7 = arith.constant dense<0.000000e+00> : vector<1xf32>
    %22 = vector.multi_reduction <add>, %21, %cst_7 [1, 2] : vector<1x12x1152xf32> to vector<1xf32>
    %23 = vector.shape_cast %22 : vector<1xf32> to vector<1x1x1xf32>
    %24 = vector.extract %23[0, 0, 0] : f32 from vector<1x1x1xf32>
    %25 = vector.broadcast %24 : f32 to vector<1x8x128xf32>
    %c0_8 = arith.constant 0 : index
    %c0_9 = arith.constant 0 : index
    %c0_10 = arith.constant 0 : index
    %26 = vector.load %arg4[%c0_8, %c0_9, %c0_10] : memref<1x8x128xf32, #tpu.memory_space<vmem>>, vector<1x8x128xf32>
    tpu.vector_store %arg4[%c0_8, %c0_9, %c0_10], %25 {strides = array<i32>} : memref<1x8x128xf32, #tpu.memory_space<vmem>>, vector<1x8x128xf32>,
    return
  }
  func.func @transform_0(%arg0: i32) -> (i32, i32) {
    %c0_i32 = arith.constant 0 : i32
    %c0_i32_0 = arith.constant 0 : i32
    %c0_i32_1 = arith.constant 0 : i32
    return %c0_i32, %c0_i32_0 : i32, i32
  }
  func.func @transform_1(%arg0: i32) -> (i32, i32) {
    %c0_i32 = arith.constant 0 : i32
    %c0_i32_0 = arith.constant 0 : i32
    return %arg0, %c0_i32 : i32, i32
  }
  func.func @transform_2(%arg0: i32) -> (i32, i32) {
    %c0_i32 = arith.constant 0 : i32
    %c0_i32_0 = arith.constant 0 : i32
    return %arg0, %c0_i32 : i32, i32
  }
  func.func @transform_3(%arg0: i32) -> (i32, i32, i32) {
    %c0_i32 = arith.constant 0 : i32
    %c0_i32_0 = arith.constant 0 : i32
    %c0_i32_1 = arith.constant 0 : i32
    return %arg0, %c0_i32, %c0_i32_0 : i32, i32, i32
  }
}

</mosaic_0001>

<bundles_post_ra>
// kernel: tpu_custom_call.1
= control target key start
LH: loop header
LB: loop body
LE: loop exit
PB: predicated region body
PF: predicated region fallthrough
CT: control target
= control target key end

     0   :  { %8 = vsyncpa [#allocation3], 0  ;;  %s1452_s0 = inlined_call_operand.hbm [shape: f32[1,1152], index: 0, kind: input, shape index: {}]   ;;  %s1453_s1 = inlined_call_operand.hbm [shape: f32[12,1152], index: 1, kind: input, shape index: {}]   ;;  %s1454_s2 = inlined_call_operand.hbm [shape: f32[12,1152], index: 2, kind: input, shape index: {}]   ;;  %s1455_s3 = inlined_call_operand.hbm [shape: f32[1,8,128], index: 3, kind: output, shape index: {}]  }
   0x1   :  { %9 = vsyncpa [#allocation6], 0 }
   0x2   :  { %10 = vsyncpa [#allocation4], 0  ;;  %s729_s12 = smov [#allocation5]  }
   0x3   :  { %s26_s13 = sshll.u32 %s729_s12, 4  ;;  %s27_s13 = int_to_ptr.vmem [resolvable:$true] %s26_s13 }
   0x4   :  { %s651_s14 = scalar_lea.vmem %s27_s13, 2304  ;;  %p656_p1 = scmp.lt.s32.totalorder %s27_s13, %s27_s13 }
   0x5   :  { %p652_p0 = scmp.ne.s32.totalorder %s27_s13, %s651_s14  ;;  %p657_p2 = scmp.lt.s32.totalorder %s651_s14, %s651_s14 }
   0x7   :  { %p658_p3 = por %p657_p2, %p656_p1 }
   0x9   :  { %p659_p4 = pnand %p658_p3, %p652_p0 }
   0xb   :  { %662 = shalt.err (!%p659_p4)
}
   0xc   :  { %s730_s15 = smov 1152   ;;  %s731_s16 = smov 72  }
   0xd   :  { %32 = dma.hbm_to_vmem [thread:$0]  %s1453_s1, 2304, %s27_s13, [#allocation6], %s730_s15, %s730_s15, %s731_s16  }
   0xe   :  { %s732_s19 = smov [#allocation2]   ;;  %s733_s21 = smov [#allocation7]  }
   0xf   :  { %s17_s20 = sshll.u32 %s732_s19, 4  ;;  %s38_s22 = sshll.u32 %s733_s21, 4  ;;  %s18_s20 = int_to_ptr.vmem [resolvable:$true] %s17_s20  ;;  %s39_s22 = int_to_ptr.vmem [resolvable:$true] %s38_s22 }
  0x10   :  { %s671_s23 = scalar_lea.vmem %s18_s20, 144  ;;  %s675_s24 = scalar_lea.vmem %s18_s20, 160 }
  0x11   :  { %p672_p5 = scmp.ne.s32.totalorder %s18_s20, %s671_s23  ;;  %p676_p6 = scmp.lt.s32.totalorder %s18_s20, %s18_s20 }
  0x12   :  { %p677_p7 = scmp.lt.s32.totalorder %s675_s24, %s671_s23 }
  0x14   :  { %p678_p8 = por %p677_p7, %p676_p6 }
  0x16   :  { %p679_p9 = pnand %p678_p8, %p672_p5 }
  0x18   :  { %682 = shalt.err (!%p679_p9)
}
  0x19   :  { %20 = dma.hbm_to_vmem [thread:$0]  %s1452_s0, 144, %s18_s20, [#allocation3]  }
  0x1a   :  { %s691_s27 = scalar_lea.vmem %s39_s22, 2304  ;;  %p696_p11 = scmp.lt.s32.totalorder %s39_s22, %s39_s22 }
  0x1b   :  { %p692_p10 = scmp.ne.s32.totalorder %s39_s22, %s691_s27  ;;  %p697_p12 = scmp.lt.s32.totalorder %s691_s27, %s691_s27 }
  0x1d   :  { %p698_p13 = por %p697_p12, %p696_p11 }
  0x1f   :  { %p699_p0 = pnand %p698_p13, %p692_p10 }
  0x21   :  { %702 = shalt.err (!%p699_p0)
}
  0x22   :  { %44 = dma.hbm_to_vmem [thread:$0]  %s1454_s2, 2304, %s39_s22, [#allocation6], %s730_s15, %s730_s15, %s731_s16  }
  0x23   :  { %723 = dma.done.wait [#allocation3], 144  }
  0x24   :  { %724 = vsyncadd [#allocation3], 4294967152 }
  0x25   :  { %725 = dma.done.wait [#allocation6], 4608  }
  0x26   :  { %726 = vsyncadd [#allocation6], 4294962688  ;;  %v94_v0 = vlaneseq  ;;  %v768_v4 = vld [vmem:[#allocation5] sm:$0xff]  ;;  %v770_v5 = vld [vmem:[#allocation5 + $0x8] sm:$0xff]  ;;  %s734_s0 = smov [#allocation8]  }
  0x27   :  { %v772_v6 = vld [vmem:[#allocation5 + $0x10] sm:$0xff]  ;;  %v777_v10 = vld [vmem:[#allocation5 + $0x18] sm:$0xff]  ;;  %v779_v11 = vld [vmem:[#allocation5 + $0x20] sm:$0xff]  ;;  %v238_v19 = vand.u32 2147483647, %v768_v4  ;;  %s552_s2 = sshll.u32 %s734_s0, 4  ;;  %s553_s2 = int_to_ptr.vmem [resolvable:$true] %s552_s2 }
  0x28   :  { %v764_v1 = vshrl.u32 %v94_v0, 7  ;;  %v781_v12 = vld [vmem:[#allocation5 + $0x28] sm:$0xff]  ;;  %v786_v16 = vld [vmem:[#allocation5 + $0x30] sm:$0xff]  ;;  %v788_v17 = vld [vmem:[#allocation5 + $0x38] sm:$0xff]  ;;  %v239_v13 = vand.u32 2147483647, %v770_v5  ;;  %p708_p2 = scmp.lt.s32.totalorder %s553_s2, %s553_s2 }
  0x29   :  { %v790_v18 = vld [vmem:[#allocation7] sm:$0xff]  ;;  %v795_v22 = vld [vmem:[#allocation5 + $0x40] sm:$0xff]  ;;  %v797_v23 = vld [vmem:[#allocation5 + $0x48] sm:$0xf]  ;;  %s703_s30 = scalar_lea.vmem %s553_s2, 128 }
  0x2a   :  { %v96_v2 = vsub.s32 0, %v764_v1  ;;  %v100_v3 = vsub.s32 1, %v764_v1  ;;  %v104_v7 = vsub.s32 2, %v764_v1  ;;  %v108_v8 = vsub.s32 3, %v764_v1  ;;  %v799_v24 = vld [vmem:[#allocation7 + $0x8] sm:$0xff]  ;;  %v807_v29 = vld [vmem:[#allocation7 + $0x10] sm:$0xff]  ;;  %p704_p1 = scmp.ne.s32.totalorder %s553_s2, %s703_s30  ;;  %p709_p3 = scmp.lt.s32.totalorder %s703_s30, %s703_s30 }
  0x2b   :  { %v112_v9 = vsub.s32 4, %v764_v1  ;;  %v148_v25 = vsub.f32 %v768_v4, %v790_v18  ;;  %v805_v28 = vld [vmem:[#allocation5 + $0x50] sm:$0xf]  ;;  %v809_v30 = vld [vmem:[#allocation7 + $0x18] sm:$0xff]  ;;  %v149_v31 = vsub.f32 %v770_v5, %v799_v24  ;;  %v815_v34 = vld [vmem:[#allocation5 + $0x58] sm:$0xf]  ;;  %v150_v38 = vsub.f32 %v772_v6, %v807_v29 }
  0x2c   :  { %v817_v35 = vld [vmem:[#allocation7 + $0x20] sm:$0xff]  ;;  %v819_v36 = vld [vmem:[#allocation7 + $0x28] sm:$0xff]  ;;  %v821_v37 = vld [vmem:[#allocation7 + $0x30] sm:$0xff]  ;;  %v151_v48 = vsub.f32 %v777_v10, %v809_v30  ;;  %p710_p4 = por %p709_p3, %p708_p2 }
  0x2d   :  { %v828_v42 = vld [vmem:[#allocation5 + $0x60] sm:$0xf]  ;;  %v830_v43 = vld [vmem:[#allocation5 + $0x68] sm:$0xf]  ;;  %v832_v44 = vld [vmem:[#allocation5 + $0x70] sm:$0xf]  ;;  %v152_v49 = vsub.f32 %v779_v11, %v817_v35  ;;  %v153_v50 = vsub.f32 %v781_v12, %v819_v36  ;;  %v154_v56 = vsub.f32 %v786_v16, %v821_v37  ;;  %v861_v59 = vmul.f32 %v148_v25, %v148_v25 }
  0x2e   :  { %v834_v45 = vld [vmem:[#allocation7 + $0x38] sm:$0xff]  ;;  %v836_v46 = vld [vmem:[#allocation7 + $0x40] sm:$0xff]  ;;  %v838_v47 = vld [vmem:[#allocation7 + $0x48] sm:$0xf]  ;;  %v873_v41 = vmul.f32 %v149_v31, %v149_v31  ;;  %v887_v26 = vmul.f32 %v150_v38, %v150_v38  ;;  %v897_v20 = vmul.f32 %v151_v48, %v151_v48  ;;  %p711_p5 = pnand %p710_p4, %p704_p1 }
  0x2f   :  { %v847_v52 = vld [vmem:[#allocation5 + $0x78] sm:$0xf]  ;;  %v849_v53 = vld [vmem:[#allocation7 + $0x50] sm:$0xf]  ;;  %v851_v54 = vld [vmem:[#allocation7 + $0x58] sm:$0xf]  ;;  %v155_v57 = vsub.f32 %v788_v17, %v834_v45  ;;  %v156_v58 = vsub.f32 %v795_v22, %v836_v46  ;;  %v157_v63 = vsub.f32 %v797_v23, %v838_v47 }
  0x30   :  { %v853_v55 = vld [vmem:[#allocation7 + $0x60] sm:$0xf]  ;;  %1463 = vst [vmem:[#allocation12_spill] sm:$0xff] %v861_v59  ;;  %v863_v60 = vld [vmem:[#allocation7 + $0x68] sm:$0xf]  ;;  %v158_v0 = vsub.f32 %v805_v28, %v849_v53  ;;  %v159_v51 = vsub.f32 %v815_v34, %v851_v54  ;;  %1464 = vst [vmem:[#allocation13_spill] sm:$0xff] %v873_v41 }
  0x31   :  { %v865_v61 = vld [vmem:[#allocation7 + $0x70] sm:$0xf]  ;;  %v90_v62 = vld [vmem:[#allocation2] sm:$0xff]  ;;  %v877_v25 = vld [vmem:[#allocation7 + $0x78] sm:$0xf]  ;;  %v160_v33 = vsub.f32 %v828_v42, %v853_v55  ;;  %v161_v32 = vsub.f32 %v830_v43, %v863_v60  ;;  %1465 = vst [vmem:[#allocation14_spill] sm:$0xff] %v887_v26 }
  0x32   :  { %v875_v40 = vld [vmem:[#allocation5 + $0x80] sm:$0xf]  ;;  %v879_v39 = vld [vmem:[#allocation7 + $0x80] sm:$0xf]  ;;  %v162_v27 = vsub.f32 %v832_v44, %v865_v61  ;;  %v891_v31 = vsub.f32 %v847_v52, %v877_v25  ;;  %1468 = vst [vmem:[#allocation17_spill] sm:$0xff] %v897_v20  ;;  %v902_v15 = vrot.slane %v90_v62, %v96_v2  ;;  %v906_v38 = vrot.slane %v90_v62, %v100_v3 }
  0x33   :  { %v895_v21 = vsub.f32 %v875_v40, %v879_v39  ;;  %v910_v14 = vrot.slane %v90_v62, %v104_v7  ;;  %v915_v48 = vrot.slane %v90_v62, %v108_v8  ;;  %v1472_v2 = vsub.s32 5, %v764_v1 }
  0x34   :  { %1466 = vst [vmem:[#allocation15_spill] sm:$0xff] %v891_v31  ;;  %v240_v3 = vand.u32 2147483647, %v772_v6  ;;  %v1474_v20 = vsub.s32 6, %v764_v1  ;;  %v1475_v26 = vsub.s32 7, %v764_v1  ;;  %v934_v8 = vmul.f32 %v152_v49, %v152_v49 }
  0x35   :  { %1467 = vst [vmem:[#allocation16_spill] sm:$0xff] %v895_v21  ;;  %1469 = vst [vmem:[#allocation18_spill] sm:$0xff] %v910_v14  ;;  %v919_v21 = vrot.slane %v90_v62, %v112_v9  ;;  %v923_v31 = vrot.slane %v90_v62, %v1472_v2  ;;  %v241_v59 = vand.u32 2147483647, %v777_v10  ;;  %v937_v9 = vmul.f32 %v153_v50, %v153_v50 }
  0x36   :  { %1470 = vst [vmem:[#allocation19_spill] sm:$0xff] %v915_v48  ;;  %v928_v7 = vrot.slane %v90_v62, %v1474_v20  ;;  %v932_v41 = vrot.slane %v90_v62, %v1475_v26  ;;  %v242_v2 = vand.u32 2147483647, %v779_v11  ;;  %v942_v48 = vmul.f32 %v155_v57, %v155_v57 }
  0x37   :  { %1471 = vst [vmem:[#allocation20_spill] sm:$0xff] %v919_v21  ;;  %1473 = vst [vmem:[#allocation21_spill] sm:$0xff] %v923_v31  ;;  %v939_v21 = vmul.f32 %v154_v56, %v154_v56  ;;  %v256_v31 = vsub.f32 0.0, %v238_v19  ;;  %v944_v14 = vmul.f32 %v156_v58, %v156_v58  ;;  %v946_v20 = vmul.f32 %v157_v63, %v157_v63 }
  0x38   :  { %1476 = vst [vmem:[#allocation22_spill] sm:$0xff] %v937_v9  ;;  %v257_v1 = vsub.f32 0.0, %v239_v13  ;;  %v948_v26 = vmul.f32 %v158_v0, %v158_v0  ;;  %v950_v49 = vmul.f32 %v159_v51, %v159_v51  ;;  %v952_v62 = vmul.f32 %v160_v33, %v160_v33  ;;  %v954_v9 = vld [vmem:[#allocation5 + $0x88] sm:$0xf] }
  0x39   :  { %1477 = vst [vmem:[#allocation23_spill] sm:$0xff] %v939_v21  ;;  %1478 = vst [vmem:[#allocation24_spill] sm:$0xff] %v944_v14  ;;  %v258_v50 = vsub.f32 0.0, %v240_v3  ;;  %v956_v56 = vmul.f32 %v161_v32, %v161_v32  ;;  %v958_v21 = vmul.f32 %v162_v27, %v162_v27  ;;  %v243_v19 = vand.u32 2147483647, %v781_v12 }
  0x3a   :  { %1479 = vst [vmem:[#allocation25_spill] sm:$0xff] %v946_v20  ;;  %1480 = vst [vmem:[#allocation26_spill] sm:$0xff] %v948_v26  ;;  %v259_v57 = vsub.f32 0.0, %v241_v59  ;;  %v260_v63 = vsub.f32 0.0, %v242_v2  ;;  %v274_v0 = vmul.f32 1.442695, %v256_v31  ;;  %v202_v58 = vmul.f32 %v790_v18, %v768_v4 }
  0x3b   :  { %1481 = vst [vmem:[#allocation27_spill] sm:$0xff] %v950_v49  ;;  %1482 = vst [vmem:[#allocation28_spill] sm:$0xff] %v952_v62  ;;  %v276_v62 = vmul.f32 1.442695, %v257_v1  ;;  %v278_v59 = vmul.f32 1.442695, %v258_v50  ;;  %v203_v33 = vmul.f32 %v799_v24, %v770_v5  ;;  %v204_v27 = vmul.f32 %v807_v29, %v772_v6 }
  0x3c   :  { %1483 = vst [vmem:[#allocation29_spill] sm:$0xff] %v954_v9  ;;  %1484 = vst [vmem:[#allocation30_spill] sm:$0xff] %v956_v56  ;;  %v245_v2 = vand.u32 2147483647, %v788_v17  ;;  %v261_v31 = vsub.f32 0.0, %v243_v19  ;;  %571 = vpow2.f32 %v274_v0  ;;  %v205_v50 = vmul.f32 %v809_v30, %v777_v10 }
  0x3d   :  { %1485 = vst [vmem:[#allocation31_spill] sm:$0xff] %v958_v21  ;;  %v244_v21 = vand.u32 2147483647, %v786_v16  ;;  %v280_v13 = vmul.f32 1.442695, %v259_v57  ;;  %573 = vpow2.f32 %v276_v62  ;;  %v206_v18 = vmul.f32 %v817_v35, %v779_v11 }
  0x3e   :  { %v246_v3 = vand.u32 2147483647, %v795_v22  ;;  %v282_v1 = vmul.f32 1.442695, %v260_v63  ;;  %v247_v32 = vand.u32 2147483647, %v797_v23  ;;  %575 = vpow2.f32 %v278_v59 }
  0x3f   :  { %v248_v19 = vand.u32 2147483647, %v805_v28  ;;  %v262_v57 = vsub.f32 0.0, %v244_v21  ;;  %v249_v24 = vand.u32 2147483647, %v815_v34  ;;  %v263_v0 = vsub.f32 0.0, %v245_v2 }
  0x40   :  { %577 = vpow2.f32 %v280_v13  ;;  %v284_v63 = vmul.f32 1.442695, %v261_v31  ;;  %v207_v29 = vmul.f32 %v819_v36, %v781_v12  ;;  %v250_v30 = vand.u32 2147483647, %v828_v42  ;;  %v1004_v14 = vld [vmem:[#allocation7 + $0x88] sm:$0xf] }
  0x41   :  { %v264_v51 = vsub.f32 0.0, %v246_v3  ;;  %579 = vpow2.f32 %v282_v1  ;;  %v208_v62 = vmul.f32 %v821_v37, %v786_v16  ;;  %v209_v35 = vmul.f32 %v834_v45, %v788_v17  ;;  %1486 = vst [vmem:[#allocation32_spill] sm:$0xff] %v1004_v14 }
  0x42   :  { %v251_v21 = vand.u32 2147483647, %v830_v43  ;;  %v265_v59 = vsub.f32 0.0, %v247_v32  ;;  %v210_v13 = vmul.f32 %v836_v46, %v795_v22  ;;  %v252_v2 = vand.u32 2147483647, %v832_v44 }
  0x43   :  { %v266_v31 = vsub.f32 0.0, %v248_v19  ;;  %v286_v36 = vmul.f32 1.442695, %v262_v57  ;;  %v253_v56 = vand.u32 2147483647, %v847_v52  ;;  %v267_v3 = vsub.f32 0.0, %v249_v24 }
  0x44   :  { %581 = vpow2.f32 %v284_v63  ;;  %v288_v1 = vmul.f32 1.442695, %v263_v0  ;;  %v211_v37 = vmul.f32 %v838_v47, %v797_v23  ;;  %v212_v45 = vmul.f32 %v849_v53, %v805_v28 }
  0x45   :  { %v268_v49 = vsub.f32 0.0, %v250_v30  ;;  %v290_v32 = vmul.f32 1.442695, %v264_v51  ;;  %v213_v46 = vmul.f32 %v851_v54, %v815_v34  ;;  %v214_v19 = vmul.f32 %v853_v55, %v828_v42 }
  0x46   :  { %v269_v57 = vsub.f32 0.0, %v251_v21  ;;  %v292_v26 = vmul.f32 1.442695, %v265_v59  ;;  %v215_v24 = vmul.f32 %v863_v60, %v830_v43  ;;  %v270_v0 = vsub.f32 0.0, %v252_v2 }
  0x47   :  { %583 = vpow2.f32 %v286_v36  ;;  %v294_v47 = vmul.f32 1.442695, %v266_v31  ;;  %v216_v53 = vmul.f32 %v865_v61, %v832_v44  ;;  %v271_v51 = vsub.f32 0.0, %v253_v56 }
  0x48   :  { %585 = vpow2.f32 %v288_v1  ;;  %v296_v63 = vmul.f32 1.442695, %v267_v3  ;;  %v217_v54 = vmul.f32 %v877_v25, %v847_v52  ;;  %v1014_v55 = vmul.f32 %v879_v39, %v875_v40 }
  0x49   :  { %587 = vpow2.f32 %v290_v32  ;;  %v298_v30 = vmul.f32 1.442695, %v268_v49  ;;  %v1016_v21 = vpop.eup %571  ;;  %v1020_v60 = vmul.f32 %v1004_v14, %v954_v9  ;;  %v1488_v61 = vmax.f32 %v768_v4, 0.0 }
  0x4a   :  { %589 = vpow2.f32 %v292_v26  ;;  %v300_v59 = vmul.f32 1.442695, %v269_v57  ;;  %v1026_v2 = vpop.eup %573  ;;  %v1489_v25 = vmax.f32 %v770_v5, 0.0  ;;  %v254_v49 = vand.u32 2147483647, %v875_v40 }
  0x4b   :  { %1487 = vst [vmem:[#allocation33_spill] sm:$0xff] %v1020_v60  ;;  %v1024_v56 = vsub.f32 %v1488_v61, %v202_v58  ;;  %591 = vpow2.f32 %v294_v47  ;;  %v302_v31 = vmul.f32 1.442695, %v270_v0  ;;  %v1033_v36 = vpop.eup %575  ;;  %v1490_v3 = vmax.f32 %v772_v6, 0.0 }
  0x4c   :  { %v1030_v39 = vsub.f32 %v1489_v25, %v203_v33  ;;  %v1491_v4 = vmax.f32 %v777_v10, 0.0  ;;  %593 = vpow2.f32 %v296_v63  ;;  %v304_v58 = vmul.f32 1.442695, %v271_v51 }
  0x4d   :  { %v1037_v1 = vsub.f32 %v1490_v3, %v204_v27  ;;  %v1043_v32 = vpop.eup %577  ;;  %v1492_v5 = vmax.f32 %v779_v11, 0.0  ;;  %v255_v57 = vand.u32 2147483647, %v954_v9  ;;  %595 = vpow2.f32 %v298_v30 }
  0x4e   :  { %v1041_v26 = vsub.f32 %v1491_v4, %v205_v50  ;;  %v310_v0 = vadd.f32 1.0, %v1016_v21  ;;  %v1051_v6 = vpop.eup %579  ;;  %v1493_v27 = vmax.f32 %v781_v12, 0.0  ;;  %v1494_v50 = vmax.f32 %v786_v16, 0.0 }
  0x4f   :  { %v1047_v33 = vsub.f32 %v1492_v5, %v206_v18  ;;  %597 = vpow2.f32 %v300_v59  ;;  %v319_v11 = vadd.f32 1.0, %v1026_v2  ;;  %v1495_v18 = vmax.f32 %v788_v17, 0.0 }
  0x50   :  { %v1055_v10 = vsub.f32 %v1493_v27, %v207_v29  ;;  %v1059_v47 = vsub.f32 %v1494_v50, %v208_v62  ;;  %v272_v63 = vsub.f32 0.0, %v254_v49  ;;  %599 = vpow2.f32 %v302_v31 }
  0x51   :  { %v1064_v51 = vsub.f32 %v1495_v18, %v209_v35  ;;  %v328_v30 = vadd.f32 1.0, %v1033_v36  ;;  %v1496_v61 = vmax.f32 %v795_v22, 0.0  ;;  %v1497_v29 = vmax.f32 %v797_v23, 0.0  ;;  %v1076_v59 = vpop.eup %581 }
  0x52   :  { %601 = vpow2.f32 %v304_v58  ;;  %v337_v62 = vadd.f32 1.0, %v1043_v32  ;;  %v1498_v17 = vmax.f32 %v805_v28, 0.0  ;;  %v273_v25 = vsub.f32 0.0, %v255_v57 }
  0x53   :  { %v1069_v12 = vsub.f32 %v1496_v61, %v210_v13  ;;  %v1073_v16 = vsub.f32 %v1497_v29, %v211_v37  ;;  %603 = vlog2.f32 %v310_v0  ;;  %v346_v49 = vadd.f32 1.0, %v1051_v6 }
  0x54   :  { %v1080_v35 = vsub.f32 %v1498_v17, %v212_v45  ;;  %v1499_v22 = vmax.f32 %v815_v34, 0.0  ;;  %v313_v23 = vmul.f32 -0.5, %v1016_v21  ;;  %605 = vlog2.f32 %v319_v11  ;;  %v1097_v58 = vpop.eup %583 }
  0x55   :  { %v322_v37 = vmul.f32 -0.5, %v1026_v2  ;;  %v1501_v31 = vmax.f32 %v828_v42, 0.0  ;;  %v1503_v28 = vmax.f32 %v830_v43, 0.0  ;;  %v306_v4 = vmul.f32 1.442695, %v272_v63  ;;  %v1105_v42 = vpop.eup %585 }
  0x56   :  { %v1085_v13 = vsub.f32 %v1499_v22, %v213_v46  ;;  %607 = vlog2.f32 %v328_v30  ;;  %v1505_v34 = vmax.f32 %v832_v44, 0.0  ;;  %v331_v5 = vmul.f32 -0.5, %v1033_v36  ;;  %v1112_v27 = vpop.eup %587 }
  0x57   :  { %v1091_v3 = vsub.f32 %v1501_v31, %v214_v19  ;;  %v1095_v45 = vsub.f32 %v1503_v28, %v215_v24  ;;  %609 = vlog2.f32 %v337_v62  ;;  %v355_v57 = vadd.f32 1.0, %v1076_v59  ;;  %v1116_v18 = vpop.eup %589 }
  0x58   :  { %1500 = vst [vmem:[#allocation34_spill] sm:$0xff] %v1085_v13  ;;  %v1101_v46 = vsub.f32 %v1505_v34, %v216_v53  ;;  %v1507_v19 = vmax.f32 %v847_v52, 0.0  ;;  %v308_v24 = vmul.f32 1.442695, %v273_v25  ;;  %v316_v0 = vand.u32 2147483647, %v1016_v21  ;;  %v1121_v30 = vpop.eup %591 }
  0x59   :  { %1502 = vst [vmem:[#allocation35_spill] sm:$0xff] %v1091_v3  ;;  %1504 = vst [vmem:[#allocation36_spill] sm:$0xff] %v1095_v45  ;;  %611 = vlog2.f32 %v346_v49  ;;  %v314_v44 = vadd.f32 1.0, %v313_v23  ;;  %v323_v53 = vadd.f32 1.0, %v322_v37  ;;  %v325_v50 = vand.u32 2147483647, %v1026_v2  ;;  %v1125_v17 = vpop.eup %593 }
  0x5a   :  { %1506 = vst [vmem:[#allocation37_spill] sm:$0xff] %v1101_v46  ;;  %v1109_v43 = vsub.f32 %v1507_v19, %v217_v54  ;;  %v340_v11 = vmul.f32 -0.5, %v1043_v32  ;;  %613 = vpow2.f32 %v306_v4  ;;  %v334_v63 = vand.u32 2147483647, %v1033_v36  ;;  %v1134_v37 = vpop.eup %595  ;;  %v1525_v13 = vld [vmem:[#allocation18_spill] sm:$0xff] }
  0x5b   :  { %v349_v52 = vmul.f32 -0.5, %v1051_v6  ;;  %v364_v54 = vadd.f32 1.0, %v1097_v58  ;;  %v332_v61 = vadd.f32 1.0, %v331_v5  ;;  %615 = vlog2.f32 %v355_v57 }
  0x5c   :  { %1508 = vst [vmem:[#allocation38_spill] sm:$0xff] %v1109_v43  ;;  %v358_v29 = vmul.f32 -0.5, %v1076_v59  ;;  %v373_v62 = vadd.f32 1.0, %v1105_v42  ;;  %v1509_v25 = vmax.f32 %v875_v40, 0.0  ;;  %617 = vpow2.f32 %v308_v24  ;;  %v1143_v5 = vpop.eup %597 }
  0x5d   :  { %v367_v22 = vmul.f32 -0.5, %v1097_v58  ;;  %v382_v23 = vadd.f32 1.0, %v1112_v27  ;;  %v1137_v31 = vmul.f32 %v1016_v21, %v314_v44  ;;  %v1140_v28 = vmul.f32 %v1026_v2, %v323_v53  ;;  %v1151_v21 = vpop.eup %599 }
  0x5e   :  { %v1130_v49 = vsub.f32 %v1509_v25, %v1014_v55  ;;  %v341_v4 = vadd.f32 1.0, %v340_v11  ;;  %v343_v34 = vand.u32 2147483647, %v1043_v32  ;;  %vm1145_vm0 = vcmp.lt.f32.partialorder %v316_v0, 0.0004427343 }
  0x5f   :  { %v350_v55 = vadd.f32 1.0, %v349_v52  ;;  %v352_v57 = vand.u32 2147483647, %v1051_v6  ;;  %619 = vlog2.f32 %v364_v54  ;;  %v376_v19 = vmul.f32 -0.5, %v1105_v42  ;;  %v1165_v11 = vpop.eup %601 }
  0x60   :  { %1510 = vst [vmem:[#allocation39_spill] sm:$0xff] %v1130_v49  ;;  %vm1153_vm1 = vcmp.lt.f32.partialorder %v325_v50, 0.0004427343  ;;  %v1158_v24 = vmul.f32 %v1033_v36, %v332_v61  ;;  %vm1160_vm2 = vcmp.lt.f32.partialorder %v334_v63, 0.0004427343  ;;  %v359_v44 = vadd.f32 1.0, %v358_v29  ;;  %v604_v25 = vpop.eup %603 }
  0x61   :  { %621 = vlog2.f32 %v373_v62  ;;  %v391_v53 = vadd.f32 1.0, %v1116_v18  ;;  %v361_v52 = vand.u32 2147483647, %v1076_v59  ;;  %v368_v54 = vadd.f32 1.0, %v367_v22  ;;  %v606_v62 = vpop.eup %605 }
  0x62   :  { %623 = vlog2.f32 %v382_v23  ;;  %v385_v50 = vmul.f32 -0.5, %v1112_v27  ;;  %v1170_v36 = vmul.f32 %v1043_v32, %v341_v4  ;;  %vm1172_vm3 = vcmp.lt.f32.partialorder %v343_v34, 0.0004427343 }
  0x63   :  { %v394_v61 = vmul.f32 -0.5, %v1116_v18  ;;  %v400_v29 = vadd.f32 1.0, %v1121_v30  ;;  %v1179_v49 = vmul.f32 %v1051_v6, %v350_v55  ;;  %vm1181_vm4 = vcmp.lt.f32.partialorder %v352_v57, 0.0004427343  ;;  %v608_v4 = vpop.eup %607 }
  0x64   :  { %v377_v23 = vadd.f32 1.0, %v376_v19  ;;  %v403_v32 = vmul.f32 -0.5, %v1121_v30  ;;  %v1187_v34 = vmul.f32 %v1076_v59, %v359_v44  ;;  %v370_v43 = vand.u32 2147483647, %v1097_v58  ;;  %v610_v9 = vpop.eup %609 }
  0x65   :  { %625 = vlog2.f32 %v391_v53  ;;  %v409_v60 = vadd.f32 1.0, %v1125_v17  ;;  %vm1191_vm5 = vcmp.lt.f32.partialorder %v361_v52, 0.0004427343  ;;  %v1196_v55 = vmul.f32 %v1097_v58, %v368_v54 }
  0x66   :  { %v379_v57 = vand.u32 2147483647, %v1105_v42  ;;  %v386_v19 = vadd.f32 1.0, %v385_v50  ;;  %v388_v14 = vand.u32 2147483647, %v1112_v27  ;;  %v612_v59 = vpop.eup %611  ;;  %v395_v46 = vadd.f32 1.0, %v394_v61 }
  0x67   :  { %v312_v44 = vmul.f32 0.6931472, %v604_v25  ;;  %627 = vlog2.f32 %v400_v29  ;;  %v418_v53 = vadd.f32 1.0, %v1134_v37  ;;  %vm139_vm6 = vcmp.gt.f32.partialorder %v902_v15, 0.5  ;;  %v1206_v3 = vpop.eup %613 }
  0x68   :  { %vm140_vm7 = vcmp.gt.f32.partialorder %v906_v38, 0.5  ;;  %v321_v52 = vmul.f32 0.6931472, %v606_v62  ;;  %v330_v45 = vmul.f32 0.6931472, %v608_v4  ;;  %v1204_v58 = vmul.f32 %v1105_v42, %v377_v23  ;;  %v616_v29 = vpop.eup %615 }
  0x69   :  { %v404_v54 = vadd.f32 1.0, %v403_v32  ;;  %v339_v50 = vmul.f32 0.6931472, %v610_v9  ;;  %vm1208_vm8 = vcmp.lt.f32.partialorder %v370_v43, 0.0004427343  ;;  %629 = vlog2.f32 %v409_v60  ;;  %v1222_v43 = vpop.eup %617 }
  0x6a   :  { %v397_v25 = vand.u32 2147483647, %v1116_v18  ;;  %v427_v61 = vadd.f32 1.0, %v1143_v5  ;;  %vm141_vm9 = vcmp.gt.f32.partialorder %v1525_v13, 0.5  ;;  %v1215_v62 = vmul.f32 0.6931472, %v612_v59 }
  0x6b   :  { %v1218_v42 = vmul.f32 %v1112_v27, %v386_v19  ;;  %v406_v23 = vand.u32 2147483647, %v1121_v30  ;;  %v412_v9 = vmul.f32 -0.5, %v1125_v17  ;;  %v318_v60 = vsel %vm1145_vm0, %v1137_v31, %v312_v44  ;;  %v1528_v19 = vld [vmem:[#allocation19_spill] sm:$0xff] }
  0x6c   :  { %vm1227_vm10 = vcmp.lt.f32.partialorder %v379_v57, 0.0004427343  ;;  %v1232_v4 = vmul.f32 %v1116_v18, %v395_v46  ;;  %631 = vlog2.f32 %v418_v53  ;;  %v436_v27 = vadd.f32 1.0, %v1151_v21  ;;  %v620_v57 = vpop.eup %619 }
  0x6d   :  { %vm142_vm11 = vcmp.gt.f32.partialorder %v1528_v19, 0.5  ;;  %v327_v59 = vsel %vm1153_vm1, %v1140_v28, %v321_v52  ;;  %v336_v31 = vsel %vm1160_vm2, %v1158_v24, %v330_v45  ;;  %vm1242_vm12 = vcmp.lt.f32.partialorder %v388_v14, 0.0004427343  ;;  %v1531_v45 = vld [vmem:[#allocation20_spill] sm:$0xff]  ;;  %v1572_v19 = vld [vmem:[#allocation30_spill] sm:$0xff] }
  0x6e   :  { %v1247_v46 = vmul.f32 %v1121_v30, %v404_v54  ;;  %v421_v18 = vmul.f32 -0.5, %v1134_v37  ;;  %v345_v44 = vsel %vm1172_vm3, %v1170_v36, %v339_v50  ;;  %v357_v2 = vmul.f32 0.6931472, %v616_v29  ;;  %v622_v0 = vpop.eup %621 }
  0x6f   :  { %633 = vlog2.f32 %v427_v61  ;;  %v445_v28 = vadd.f32 1.0, %v1165_v11  ;;  %vm143_vm13 = vcmp.gt.f32.partialorder %v1531_v45, 0.5  ;;  %v354_v14 = vsel %vm1181_vm4, %v1179_v49, %v1215_v62  ;;  %v624_v53 = vpop.eup %623  ;;  %v1534_v61 = vld [vmem:[#allocation21_spill] sm:$0xff] }
  0x70   :  { %vm1259_vm14 = vcmp.lt.f32.partialorder %v397_v25, 0.0004427343  ;;  %v413_v24 = vadd.f32 1.0, %v412_v9  ;;  %v415_v63 = vand.u32 2147483647, %v1125_v17  ;;  %635 = vlog2.f32 %v436_v27 }
  0x71   :  { %v424_v36 = vand.u32 2147483647, %v1134_v37  ;;  %v454_v52 = vadd.f32 1.0, %v1206_v3  ;;  %v472_v54 = vadd.f32 %v318_v60, %v1024_v56  ;;  %v473_v50 = vadd.f32 %v327_v59, %v1030_v39 }
  0x72   :  { %vm144_vm15 = vcmp.gt.f32.partialorder %v1534_v61, 0.5  ;;  %v366_v49 = vmul.f32 0.6931472, %v620_v57  ;;  %vm1269_vm0 = vcmp.lt.f32.partialorder %v406_v23, 0.0004427343  ;;  %v422_v25 = vadd.f32 1.0, %v421_v18  ;;  %v626_v60 = vpop.eup %625 }
  0x73   :  { %v430_v29 = vmul.f32 -0.5, %v1143_v5  ;;  %v439_v62 = vmul.f32 -0.5, %v1151_v21  ;;  %v363_v9 = vsel %vm1191_vm5, %v1187_v34, %v357_v2  ;;  %637 = vlog2.f32 %v445_v28  ;;  %v1289_v34 = vld [vmem:[#allocation2 + $0x8] ss:$0 sm:$0xff]  ;;  %v1540_v2 = vld [vmem:[#allocation13_spill] sm:$0xff] }
  0x74   :  { %v463_v56 = vadd.f32 1.0, %v1222_v43  ;;  %v474_v39 = vadd.f32 %v336_v31, %v1037_v1  ;;  %vm145_vm1 = vcmp.gt.f32.partialorder %v928_v7, 0.5  ;;  %v375_v23 = vmul.f32 0.6931472, %v622_v0  ;;  %v1539_v1 = vld [vmem:[#allocation12_spill] sm:$0xff]  ;;  %v628_v28 = vpop.eup %627 }
  0x75   :  { %v384_v27 = vmul.f32 0.6931472, %v624_v53  ;;  %v1282_v59 = vmul.f32 %v1125_v17, %v413_v24  ;;  %vm1284_vm2 = vcmp.lt.f32.partialorder %v415_v63, 0.0004427343  ;;  %v433_v6 = vand.u32 2147483647, %v1143_v5 }
  0x76   :  { %639 = vlog2.f32 %v454_v52  ;;  %v475_v57 = vadd.f32 %v345_v44, %v1041_v26  ;;  %v490_v31 = vsel %vm139_vm6, %v1539_v1, %v472_v54  ;;  %v491_v17 = vsel %vm140_vm7, %v1540_v2, %v473_v50  ;;  %v1543_v54 = vld [vmem:[#allocation14_spill] sm:$0xff]  ;;  %v630_v1 = vpop.eup %629 }
  0x77   :  { %vm146_vm3 = vcmp.gt.f32.partialorder %v932_v41, 0.5  ;;  %v372_v0 = vsel %vm1208_vm8, %v1196_v55, %v366_v49  ;;  %v1303_v24 = vmul.f32 %v1134_v37, %v422_v25  ;;  %vm1305_vm4 = vcmp.lt.f32.partialorder %v424_v36, 0.0004427343  ;;  %v1546_v25 = vld [vmem:[#allocation17_spill] sm:$0xff] }
  0x78   :  { %v431_v44 = vadd.f32 1.0, %v430_v29  ;;  %v440_v63 = vadd.f32 1.0, %v439_v62  ;;  %v393_v53 = vmul.f32 0.6931472, %v626_v60  ;;  %641 = vlog2.f32 %v463_v56 }
  0x79   :  { %v476_v52 = vadd.f32 %v354_v14, %v1047_v33  ;;  %v492_v50 = vsel %vm141_vm9, %v1543_v54, %v474_v39  ;;  %vm147_vm5 = vcmp.gt.f32.partialorder %v1289_v34, 0.5  ;;  %v381_v20 = vsel %vm1227_vm10, %v1204_v58, %v375_v23  ;;  %v632_v32 = vpop.eup %631 }
  0x7a   :  { %vm1317_vm8 = vcmp.lt.f32.partialorder %v433_v6, 0.0004427343  ;;  %v442_v55 = vand.u32 2147483647, %v1151_v21  ;;  %v508_v36 = vadd.f32 %v491_v17, %v490_v31  ;;  %v390_v33 = vsel %vm1242_vm12, %v1218_v42, %v384_v27  ;;  %v1549_v6 = vld [vmem:[#allocation22_spill] sm:$0xff] }
  0x7b   :  { %v402_v14 = vmul.f32 0.6931472, %v628_v28  ;;  %v477_v49 = vadd.f32 %v363_v9, %v1055_v10  ;;  %v493_v29 = vsel %vm142_vm11, %v1546_v25, %v475_v57  ;;  %v432_v58 = vmul.f32 %v1143_v5, %v431_v44  ;;  %v1550_v44 = vld [vmem:[#allocation23_spill] sm:$0xff]  ;;  %v1555_v25 = vld [vmem:[#allocation24_spill] sm:$0xff] }
  0x7c   :  { %v1331_v62 = vmul.f32 %v1151_v21, %v440_v63  ;;  %v448_v56 = vmul.f32 -0.5, %v1165_v11  ;;  %v509_v39 = vadd.f32 %v508_v36, %v492_v50  ;;  %vm516_vm10 = vcmask 1043456   ;;  %v634_v60 = vpop.eup %633 }
  0x7d   :  { %v399_v42 = vsel %vm1259_vm14, %v1232_v4, %v393_v53  ;;  %v411_v40 = vmul.f32 0.6931472, %v630_v1  ;;  %v478_v10 = vadd.f32 %v372_v0, %v1059_v47  ;;  %v494_v9 = vsel %vm143_vm13, %v934_v8, %v476_v52  ;;  %v636_v57 = vpop.eup %635 }
  0x7e   :  { %vm1341_vm12 = vcmp.lt.f32.partialorder %v442_v55, 0.0004427343  ;;  %v451_v21 = vand.u32 2147483647, %v1165_v11  ;;  %v457_v23 = vmul.f32 -0.5, %v1206_v3  ;;  %v510_v27 = vadd.f32 %v509_v39, %v493_v29  ;;  %v1553_v55 = vld [vmem:[#allocation34_spill] sm:$0xff] }
  0x7f   :  { %v408_v4 = vsel %vm1269_vm0, %v1247_v46, %v402_v14  ;;  %v420_v30 = vmul.f32 0.6931472, %v632_v32  ;;  %v479_v47 = vadd.f32 %v381_v20, %v1064_v51  ;;  %v495_v8 = vsel %vm144_vm15, %v1549_v6, %v477_v49  ;;  %v1557_v39 = vld [vmem:[#allocation26_spill] sm:$0xff] }
  0x80   :  { %v449_v31 = vadd.f32 1.0, %v448_v56  ;;  %v466_v2 = vmul.f32 -0.5, %v1222_v43  ;;  %v481_v17 = vadd.f32 %v399_v42, %v1073_v16  ;;  %v511_v28 = vadd.f32 %v510_v27, %v494_v9  ;;  %v638_v63 = vpop.eup %637 }
  0x81   :  { %v417_v0 = vsel %vm1284_vm2, %v1282_v59, %v411_v40  ;;  %v429_v22 = vmul.f32 0.6931472, %v634_v60  ;;  %v480_v46 = vadd.f32 %v390_v33, %v1069_v12  ;;  %v496_v51 = vsel %vm145_vm1, %v1550_v44, %v478_v10  ;;  %v1554_v33 = vld [vmem:[#allocation25_spill] sm:$0xff]  ;;  %v1560_v60 = vld [vmem:[#allocation36_spill] sm:$0xff] }
  0x82   :  { %vm1363_vm14 = vcmp.lt.f32.partialorder %v451_v21, 0.0004427343  ;;  %v460_v52 = vand.u32 2147483647, %v1206_v3  ;;  %v482_v16 = vadd.f32 %v408_v4, %v1080_v35  ;;  %v512_v54 = vadd.f32 %v511_v28, %v495_v8  ;;  %v1565_v8 = vld [vmem:[#allocation28_spill] sm:$0xff]  ;;  %v1568_v28 = vld [vmem:[#allocation15_spill] sm:$0xff] }
  0x83   :  { %v426_v59 = vsel %vm1305_vm4, %v1303_v24, %v420_v30  ;;  %v438_v18 = vmul.f32 0.6931472, %v636_v57  ;;  %v458_v12 = vadd.f32 1.0, %v457_v23  ;;  %v497_v50 = vsel %vm146_vm3, %v942_v48, %v479_v47  ;;  %v640_v1 = vpop.eup %639  ;;  %v1561_v23 = vld [vmem:[#allocation27_spill] sm:$0xff]  ;;  %v1564_v47 = vld [vmem:[#allocation37_spill] sm:$0xff] }
  0x84   :  { %v450_v20 = vmul.f32 %v1165_v11, %v449_v31  ;;  %v483_v36 = vadd.f32 %v417_v0, %v1553_v55  ;;  %v499_v35 = vsel %vm139_vm6, %v1554_v33, %v481_v17  ;;  %v513_v14 = vadd.f32 %v512_v54, %v496_v51  ;;  %v1556_v11 = vld [vmem:[#allocation35_spill] sm:$0xff]  ;;  %v1566_v31 = vld [vmem:[#allocation32_spill] sm:$0xff] }
  0x85   :  { %v435_v26 = vsel %vm1317_vm8, %v432_v58, %v429_v22  ;;  %v447_v24 = vmul.f32 0.6931472, %v638_v63  ;;  %v467_v49 = vadd.f32 1.0, %v466_v2  ;;  %v498_v29 = vsel %vm147_vm5, %v1555_v25, %v480_v46  ;;  %v642_v48 = vpop.eup %641  ;;  %v1567_v2 = vld [vmem:[#allocation29_spill] sm:$0xff]  ;;  %v1571_v63 = vld [vmem:[#allocation38_spill] sm:$0xff] }
  0x86   :  { %v469_v32 = vand.u32 2147483647, %v1222_v43  ;;  %v484_v56 = vadd.f32 %v426_v59, %v1556_v11  ;;  %v500_v15 = vsel %vm140_vm7, %v1557_v39, %v482_v16  ;;  %v514_v42 = vadd.f32 %v513_v14, %v497_v50  ;;  %v1569_v46 = vld [vmem:[#allocation33_spill] sm:$0xff]  ;;  %v1574_v50 = vld [vmem:[#allocation39_spill] sm:$0xff] }
  0x87   :  { %v444_v37 = vsel %vm1341_vm12, %v1331_v62, %v438_v18  ;;  %v456_v58 = vmul.f32 0.6931472, %v640_v1  ;;  %v459_v40 = vmul.f32 %v1206_v3, %v458_v12  ;;  %v517_v10 = vsel %vm516_vm10, %v499_v35, 0.0  ;;  %v1573_v18 = vld [vmem:[#allocation16_spill] sm:$0xff] }
  0x88   :  { %vm1395_vm6 = vcmp.lt.f32.partialorder %v460_v52, 0.0004427343  ;;  %v485_v21 = vadd.f32 %v435_v26, %v1560_v60  ;;  %v501_v38 = vsel %vm141_vm9, %v1561_v23, %v483_v36  ;;  %v515_v27 = vadd.f32 %v514_v42, %v498_v29 }
  0x89   :  { %v453_v5 = vsel %vm1363_vm14, %v450_v20, %v447_v24  ;;  %v465_v62 = vmul.f32 0.6931472, %v642_v48  ;;  %v468_v4 = vmul.f32 %v1222_v43, %v467_v49  ;;  %v519_v3 = vsel %vm516_vm10, %v500_v15, 0.0  ;;  %v1575_v20 = vld [vmem:[#allocation31_spill] sm:$0xff] }
  0x8a   :  { %vm1407_vm7 = vcmp.lt.f32.partialorder %v469_v32, 0.0004427343  ;;  %v486_v6 = vadd.f32 %v444_v37, %v1564_v47  ;;  %v502_v13 = vsel %vm142_vm11, %v1565_v8, %v484_v56  ;;  %v518_v57 = vadd.f32 %v517_v10, %v515_v27 }
  0x8b   :  { %v165_v17 = vsub.f32 %v1567_v2, %v1566_v31  ;;  %v181_v0 = vmul.f32 %v1568_v28, %v1568_v28  ;;  %v462_v43 = vsel %vm1395_vm6, %v459_v40, %v456_v58  ;;  %v521_v22 = vsel %vm516_vm10, %v501_v38, 0.0 }
  0x8c   :  { %v1570_v44 = vmax.f32 %v1567_v2, 0.0  ;;  %v487_v53 = vadd.f32 %v453_v5, %v1571_v63  ;;  %v503_v52 = vsel %vm143_vm13, %v1572_v19, %v485_v21  ;;  %v520_v16 = vadd.f32 %v519_v3, %v518_v57 }
  0x8d   :  { %v471_v54 = vsel %vm1407_vm7, %v468_v4, %v465_v62  ;;  %v523_v59 = vsel %vm516_vm10, %v502_v13, 0.0  ;;  %v182_v12 = vmul.f32 %v1573_v18, %v1573_v18  ;;  %v488_v1 = vadd.f32 %v462_v43, %v1574_v50 }
  0x8e   :  { %v237_v51 = vsub.f32 %v1570_v44, %v1569_v46  ;;  %v504_v55 = vsel %vm144_vm15, %v1575_v20, %v486_v6  ;;  %v522_v36 = vadd.f32 %v521_v22, %v520_v16  ;;  %v525_v33 = vsel %vm516_vm10, %v503_v52, 0.0 }
  0x8f   :  { %v183_v45 = vmul.f32 %v165_v17, %v165_v17  ;;  %v505_v14 = vsel %vm145_vm1, %v181_v0, %v487_v53  ;;  %v527_v24 = vsel %vm516_vm10, %v504_v55, 0.0  ;;  %v506_v49 = vsel %vm146_vm3, %v182_v12, %v488_v1 }
  0x90   :  { %v489_v35 = vadd.f32 %v471_v54, %v237_v51  ;;  %v524_v26 = vadd.f32 %v523_v59, %v522_v36  ;;  %v529_v29 = vsel %vm516_vm10, %v505_v14, 0.0  ;;  %v531_v32 = vsel %vm516_vm10, %v506_v49, 0.0 }
  0x92   :  { %v526_v25 = vadd.f32 %v525_v33, %v524_v26  ;;  %v507_v61 = vsel %vm147_vm5, %v183_v45, %v489_v35 }
  0x93   :  { %v533_v56 = vsel %vm516_vm10, %v507_v61, 0.0 }
  0x94   :  { %v528_v48 = vadd.f32 %v527_v24, %v526_v25 }
  0x96   :  { %v530_v11 = vadd.f32 %v529_v29, %v528_v48 }
  0x98   :  { %v532_v7 = vadd.f32 %v531_v32, %v530_v11 }
  0x9a   :  { %v534_v39 = vadd.f32 %v533_v56, %v532_v7 }
  0x9c   :  { %535 = vadd.xlane.f32.xlu0 %v534_v39 }
 0x125   :  { %v536_v15 = vpop.xlane.xlu0 %535 }
 0x126   :  { %v537_v42 = vrot.slane %v536_v15, 4 }
 0x128   :  { %v538_v37 = vadd.f32 %v537_v42, %v536_v15 }
 0x12a   :  { %v539_v41 = vrot.slane %v538_v37, 2 }
 0x12c   :  { %v540_v58 = vadd.f32 %v539_v41, %v538_v37 }
 0x12e   :  { %v541_v40 = vrot.slane %v540_v58, 1 }
 0x130   :  { %v542_v10 = vadd.f32 %v541_v40, %v540_v58 }
 0x132   :  { %563 = vpush %v542_v10 }
 0x163   :  { %s564_s29 = spop %563 }
 0x164   :  { %v544_v34 = vstv %s564_s29 }
 0x165   :  { %545 = vst [vmem:[#allocation8] sm:$0xff] %v544_v34 }
 0x166   :  { %714 = shalt.err (!%p711_p5)
}
 0x167   :  { %555 = dma.vmem_to_hbm [thread:$0]  %s553_s2, 128, %s1455_s3, [#allocation4]  }
 0x168   :  { %727 = dma.done.wait [#allocation4], 128  }
 0x169   :  { %728 = vsyncadd [#allocation4], 4294967168 }
 0x16a   :  { %559 = vsyncpa [#allocation3], 1 }
 0x16b   :  { %560 = vsyncpa [#allocation6], 1 }
 0x16c   :  { %561 = vsyncpa [#allocation4], 1 }

</bundles_post_ra>
